<compile_context>
chip_gen: v5e
topology: v5e:2x2
jax: 0.10.0
libtpu: 0.0.40
codegen_flags: <defaults>
</compile_context>

<pallas_src>
import functools

import jax
import jax.numpy as jnp
from jax.experimental import pallas as pl
from jax.experimental.pallas import tpu as pltpu


LANE = 128


def _round_up(x, m):
    return (x + m - 1) // m * m


def _vmem_limit_bytes():
    # v7x: 64 MiB VMEM per TensorCore; v5e/v6e: 128 MiB. Leave headroom.
    try:
        info = pltpu.get_tpu_info()
        cap = getattr(info, "vmem_capacity_bytes", 64 << 20)
    except Exception:
        cap = 64 << 20
    return int(min(100 << 20, (cap * 3) // 4))


def _largest_tile(n_pad, cap):
    """Largest multiple of LANE that divides n_pad and is <= cap."""
    t = (min(cap, n_pad) // LANE) * LANE
    while t > LANE and n_pad % t:
        t -= LANE
    return max(t, LANE)


def _vmem_bytes(n_pad, cin_pad, h_pad, tile_m, tile_k, out_bytes, x_resident):
    a = 2 * tile_m * tile_k * 1                      # int8 adjacency, double-buffered
    w = 2 * 2 * cin_pad * h_pad * 2                  # Wl^T + Wr^T (bf16), double-buffered
    b = 2 * h_pad * 4                                # bias
    d = 2 * tile_m * 4                               # 1/deg
    o = 2 * tile_m * h_pad * out_bytes               # output tile
    s = tile_m * cin_pad * 4 + tile_m * h_pad * 4    # acc + self scratch (f32)
    if x_resident:
        x = 2 * n_pad * cin_pad * 2                  # whole X resident (bf16)
    else:
        x = 2 * (tile_k + tile_m) * cin_pad * 2      # streamed neighbor + self tiles
    return a + w + b + d + o + s + x


def _choose_plan(n_pad, cin_pad, h_pad, out_bytes, budget):
    # Preference: fully VMEM-resident X > large tile_m > large tile_k.
    for x_resident in (True, False):
        for cap_m in (512, 256, 128):
            tm = _largest_tile(n_pad, cap_m)
            for cap_k in (2048, 1024, 512, 256, 128):
                tk = _largest_tile(n_pad, cap_k)
                if _vmem_bytes(n_pad, cin_pad, h_pad, tm, tk, out_bytes,
                               x_resident) <= budget:
                    return tm, tk, x_resident
    return LANE, LANE, False


# ----------------------------------------------------------------------------
# Kernels: one SAGEConv layer, grid = (N_pad // TM, N_pad // TK), reduction last.
#   acc accumulates counts[i, k] @ X[k] in f32; the self projection + bias is
#   hoisted to k == 0; on the last k-step acc is scaled by 1/deg (exact f32
#   mean), projected with Wl^T, added to the self term, ReLU'd (if requested).
# ----------------------------------------------------------------------------
def _sage_kernel_resident(a_ref, x_ref, dinv_ref, wl_ref, wr_ref, b_ref, o_ref,
                          acc_ref, self_ref, *, tile_m, tile_k, apply_relu):
    i = pl.program_id(0)
    k = pl.program_id(1)

    @pl.when(k == 0)
    def _init():
        acc_ref[...] = jnp.zeros_like(acc_ref)
        # Hoisted self projection (+ bias), off the finalize step.
        rs = pl.multiple_of(i * tile_m, LANE)
        x_self = x_ref[pl.ds(rs, tile_m), :]
        self_ref[...] = (jnp.dot(x_self, wr_ref[...],
                                 preferred_element_type=jnp.float32)
                         + b_ref[...])

    # Neighbor sum: int8 count-adjacency tile (upcast on VPU) @ resident X slice.
    ks = pl.multiple_of(k * tile_k, LANE)
    x_nb = x_ref[pl.ds(ks, tile_k), :]
    acc_ref[...] += jnp.dot(a_ref[...].astype(jnp.bfloat16), x_nb,
                            preferred_element_type=jnp.float32)

    @pl.when(k == pl.num_programs(1) - 1)
    def _finalize():
        agg = (acc_ref[...] * dinv_ref[...]).astype(jnp.bfloat16)  # exact f32 mean
        out = jnp.dot(agg, wl_ref[...], preferred_element_type=jnp.float32)
        out = out + self_ref[...]
        if apply_relu:
            out = jnp.maximum(out, 0.0)
        o_ref[...] = out.astype(o_ref.dtype)


def _sage_kernel_streamed(a_ref, xnb_ref, xself_ref, dinv_ref, wl_ref, wr_ref,
                          b_ref, o_ref, acc_ref, self_ref, *, apply_relu):
    k = pl.program_id(1)

    @pl.when(k == 0)
    def _init():
        acc_ref[...] = jnp.zeros_like(acc_ref)
        self_ref[...] = (jnp.dot(xself_ref[...], wr_ref[...],
                                 preferred_element_type=jnp.float32)
                         + b_ref[...])

    acc_ref[...] += jnp.dot(a_ref[...].astype(jnp.bfloat16), xnb_ref[...],
                            preferred_element_type=jnp.float32)

    @pl.when(k == pl.num_programs(1) - 1)
    def _finalize():
        agg = (acc_ref[...] * dinv_ref[...]).astype(jnp.bfloat16)
        out = jnp.dot(agg, wl_ref[...], preferred_element_type=jnp.float32)
        out = out + self_ref[...]
        if apply_relu:
            out = jnp.maximum(out, 0.0)
        o_ref[...] = out.astype(o_ref.dtype)


def sage_conv_pallas(a_pad, x_pad, dinv, w_l, w_r, b, *, tile_m, tile_k,
                     x_resident, apply_relu, out_dtype, vmem_limit):
    n_pad = a_pad.shape[0]
    cin_pad = x_pad.shape[1]
    h_pad = w_l.shape[1]
    grid = (n_pad // tile_m, n_pad // tile_k)

    weight_specs = [
        pl.BlockSpec((cin_pad, h_pad), lambda i, k: (0, 0)),      # Wl^T (resident)
        pl.BlockSpec((cin_pad, h_pad), lambda i, k: (0, 0)),      # Wr^T (resident)
        pl.BlockSpec((1, h_pad), lambda i, k: (0, 0)),            # bias
    ]
    scratch = [pltpu.VMEM((tile_m, cin_pad), jnp.float32),        # acc
               pltpu.VMEM((tile_m, h_pad), jnp.float32)]          # self projection

    if x_resident:
        kernel = functools.partial(_sage_kernel_resident, tile_m=tile_m,
                                   tile_k=tile_k, apply_relu=apply_relu)
        in_specs = [
            pl.BlockSpec((tile_m, tile_k), lambda i, k: (i, k)),  # A (int8 counts)
            pl.BlockSpec((n_pad, cin_pad), lambda i, k: (0, 0)),  # X (VMEM-resident)
            pl.BlockSpec((tile_m, 1), lambda i, k: (i, 0)),       # 1/deg (f32)
        ] + weight_specs
        args = (a_pad, x_pad, dinv, w_l, w_r, b)
    else:
        kernel = functools.partial(_sage_kernel_streamed, apply_relu=apply_relu)
        in_specs = [
            pl.BlockSpec((tile_m, tile_k), lambda i, k: (i, k)),      # A (int8 counts)
            pl.BlockSpec((tile_k, cin_pad), lambda i, k: (k, 0)),     # X (neighbors)
            pl.BlockSpec((tile_m, cin_pad), lambda i, k: (i, 0)),     # X (self rows)
            pl.BlockSpec((tile_m, 1), lambda i, k: (i, 0)),           # 1/deg (f32)
        ] + weight_specs
        args = (a_pad, x_pad, x_pad, dinv, w_l, w_r, b)

    return pl.pallas_call(
        kernel,
        out_shape=jax.ShapeDtypeStruct((n_pad, h_pad), out_dtype),
        grid_spec=pltpu.PrefetchScalarGridSpec(
            num_scalar_prefetch=0,
            grid=grid,
            in_specs=in_specs,
            out_specs=pl.BlockSpec((tile_m, h_pad), lambda i, k: (i, 0)),
            scratch_shapes=scratch,
        ),
        compiler_params=pltpu.CompilerParams(
            dimension_semantics=("parallel", "arbitrary"),
            vmem_limit_bytes=vmem_limit,
        ),
    )(*args)


# ----------------------------------------------------------------------------
# Glue: adjacency counts + per-row 1/deg, built once at padded size / final dtype.
# ----------------------------------------------------------------------------
def build_adjacency_padded(edge_index, num_nodes, n_pad):
    del num_nodes  # node ids already index into the padded buffer
    src = edge_index[0]
    dst = edge_index[1]
    # Edge-multiplicity counts (message x_j flows src -> dst).
    # TODO(synk): per-edge multiplicity > 127 would overflow int8 counts.
    counts = jnp.zeros((n_pad, n_pad), jnp.int8).at[dst, src].add(1)
    deg = jnp.sum(counts, axis=1, keepdims=True, dtype=jnp.int32).astype(jnp.float32)
    dinv = jnp.where(deg > 0, 1.0 / jnp.maximum(deg, 1.0), 0.0)  # mean of empty = 0
    return counts, dinv


# ----------------------------------------------------------------------------
# Parameters (pre-transposed, lane-padded, bf16; f32 copies kept for reference).
# ----------------------------------------------------------------------------
def init_sage_params(key, in_channels, hidden_channels, num_layers):
    h_pad = _round_up(hidden_channels, LANE)
    params = []
    for i in range(num_layers):
        cin = in_channels if i == 0 else hidden_channels
        cin_pad = _round_up(cin, LANE)
        key, k1, k2, k3 = jax.random.split(key, 4)
        scale = 1.0 / jnp.sqrt(jnp.float32(cin))
        w_l = jax.random.uniform(k1, (hidden_channels, cin), jnp.float32, -scale, scale)
        w_r = jax.random.uniform(k2, (hidden_channels, cin), jnp.float32, -scale, scale)
        b_l = jax.random.uniform(k3, (hidden_channels,), jnp.float32, -scale, scale)
        wl_t = (jnp.zeros((cin_pad, h_pad), jnp.float32)
                .at[:cin, :hidden_channels].set(w_l.T).astype(jnp.bfloat16))
        wr_t = (jnp.zeros((cin_pad, h_pad), jnp.float32)
                .at[:cin, :hidden_channels].set(w_r.T).astype(jnp.bfloat16))
        b = jnp.zeros((1, h_pad), jnp.float32).at[0, :hidden_channels].set(b_l)
        params.append(dict(w_l=wl_t, w_r=wr_t, b=b,
                           w_l_f32=w_l, w_r_f32=w_r, b_f32=b_l))
    return params


# ----------------------------------------------------------------------------
# Full SAGE forward (num_layers SAGEConv layers).
# ----------------------------------------------------------------------------
def sage_forward(params, x, edge_index, hidden_channels):
    num_layers = len(params)
    n, cin = x.shape

    # Pad N only to the 128-lane boundary; tiles below divide n_pad exactly.
    n_pad = _round_up(n, LANE)

    a_pad, dinv = build_adjacency_padded(edge_index, n, n_pad)

    cin_pad = _round_up(cin, LANE)
    h = (jnp.zeros((n_pad, cin_pad), jnp.bfloat16)
         .at[:n, :cin].set(x.astype(jnp.bfloat16)))

    vmem_limit = _vmem_limit_bytes()
    plan_budget = int(vmem_limit * 0.8)

    for i, p in enumerate(params):
        last = i == num_layers - 1
        out_dtype = jnp.float32 if last else jnp.bfloat16
        c_in_pad = h.shape[1]
        h_pad = p["w_l"].shape[1]
        tm, tk, resident = _choose_plan(n_pad, c_in_pad, h_pad,
                                        jnp.dtype(out_dtype).itemsize, plan_budget)
        h = sage_conv_pallas(
            a_pad, h, dinv, p["w_l"], p["w_r"], p["b"],
            tile_m=tm, tile_k=tk, x_resident=resident,
            apply_relu=not last, out_dtype=out_dtype, vmem_limit=vmem_limit,
        )
        # F.dropout(p=0.5, training=False) is the identity in inference mode.

    return h[:n, :hidden_channels]


# ----------------------------------------------------------------------------
# Pure-JAX f32 reference (same dense-mean semantics as torch_geometric SAGEConv).
# ----------------------------------------------------------------------------
def _reference_forward(params, x, edge_index, num_nodes):
    adj = (jnp.zeros((num_nodes, num_nodes), jnp.float32)
           .at[edge_index[1], edge_index[0]].add(1.0))
    deg = jnp.sum(adj, axis=1, keepdims=True)
    adj_mean = adj / jnp.maximum(deg, 1.0)
    h = x
    for i, p in enumerate(params):
        agg = adj_mean @ h
        h_new = agg @ p["w_l_f32"].T + p["b_f32"] + h @ p["w_r_f32"].T
        if i != len(params) - 1:
            h_new = jnp.maximum(h_new, 0.0)
        h = h_new
    return h


if __name__ == "__main__":
    key = jax.random.PRNGKey(0)
    k_x, k_e, k_p = jax.random.split(key, 3)

    num_nodes = 16
    in_channels = 8
    hidden_channels = 32
    num_layers = 2
    num_edges = 48

    x = jax.random.normal(k_x, (num_nodes, in_channels), dtype=jnp.float32)
    edge_index = jax.random.randint(k_e, (2, num_edges), 0, num_nodes, dtype=jnp.int32)

    params = init_sage_params(k_p, in_channels, hidden_channels, num_layers)

    out = sage_forward(params, x, edge_index, hidden_channels)
    out = jax.block_until_ready(out)
    assert out.shape == (num_nodes, hidden_channels)
    assert jnp.all(jnp.isfinite(out))

    ref = _reference_forward(params, x, edge_index, num_nodes)
    max_err = float(jnp.max(jnp.abs(out - ref)))
    assert max_err < 0.15, f"max |pallas - ref| = {max_err}"
    print("KERNEL_OK")
</pallas_src>

<mosaic_0001>
module attributes {stable_mosaic.version = 11 : i64} {
  func.func @_sage_kernel_resident(%arg0: i32, %arg1: i32, %arg2: memref<128x128xi8, #tpu.memory_space<vmem>>, %arg3: memref<128x128xbf16, #tpu.memory_space<vmem>>, %arg4: memref<128x1xf32, #tpu.memory_space<vmem>>, %arg5: memref<128x128xbf16, #tpu.memory_space<vmem>>, %arg6: memref<128x128xbf16, #tpu.memory_space<vmem>>, %arg7: memref<1x128xf32, #tpu.memory_space<vmem>>, %arg8: memref<128x128xbf16, #tpu.memory_space<vmem>>, %arg9: memref<128x128xf32, #tpu.memory_space<vmem>>, %arg10: memref<128x128xf32, #tpu.memory_space<vmem>>) attributes {dimension_semantics = [#tpu.dimension_semantics<parallel>, #tpu.dimension_semantics<arbitrary>], iteration_bounds = array<i64: 1, 1>, scalar_prefetch = 0 : i64, scratch_operands = 2 : i64, tpu.core_type = #tpu.core_type<tc>, window_params = [{transform_indices = @transform_0, window_bounds = array<i64: 128, 128>}, {pipeline_mode = #tpu.pipeline_mode<synchronous>, transform_indices = @transform_1, window_bounds = array<i64: 128, 128>}, {transform_indices = @transform_2, window_bounds = array<i64: 128, 1>}, {pipeline_mode = #tpu.pipeline_mode<synchronous>, transform_indices = @transform_3, window_bounds = array<i64: 128, 128>}, {pipeline_mode = #tpu.pipeline_mode<synchronous>, transform_indices = @transform_4, window_bounds = array<i64: 128, 128>}, {pipeline_mode = #tpu.pipeline_mode<synchronous>, transform_indices = @transform_5, window_bounds = array<i64: 1, 128>}, {transform_indices = @transform_6, window_bounds = array<i64: 128, 128>}]} {
    %c0_i32 = arith.constant 0 : i32
    %0 = arith.cmpi eq, %arg1, %c0_i32 : i32
    %1 = arith.extui %0 : i1 to i32
    %c0_i32_0 = arith.constant 0 : i32
    %2 = arith.cmpi ne, %1, %c0_i32_0 : i32
    scf.if %2 {
      %cst_9 = arith.constant 0.000000e+00 : f32
      %16 = vector.broadcast %cst_9 : f32 to vector<128x128xf32>
      %c0_10 = arith.constant 0 : index
      %c0_11 = arith.constant 0 : index
      %17 = vector.load %arg9[%c0_10, %c0_11] : memref<128x128xf32, #tpu.memory_space<vmem>>, vector<128x128xf32>
      tpu.vector_store %arg9[%c0_10, %c0_11], %16 {strides = array<i32>} : memref<128x128xf32, #tpu.memory_space<vmem>>, vector<128x128xf32>,
      %c128_i32_12 = arith.constant 128 : i32
      %18 = arith.muli %arg0, %c128_i32_12 : i32
      %19 = tpu.assume_multiple %18, 128 : i32
      %20 = arith.index_cast %19 : i32 to index
      %c0_13 = arith.constant 0 : index
      %21 = vector.load %arg3[%20, %c0_13] : memref<128x128xbf16, #tpu.memory_space<vmem>>, vector<128x128xbf16>
      %c0_14 = arith.constant 0 : index
      %c0_15 = arith.constant 0 : index
      %22 = vector.load %arg6[%c0_14, %c0_15] : memref<128x128xbf16, #tpu.memory_space<vmem>>, vector<128x128xbf16>
      %cst_16 = arith.constant dense<0.000000e+00> : vector<128x128xf32>
      %23 = tpu.matmul %21, %22, %cst_16 {dimension_numbers = #tpu.dot_dimension_numbers<[1], [0], [0], [1], [0, 0, 1, 1], [], []>} : vector<128x128xbf16>, vector<128x128xbf16>, vector<128x128xf32> -> vector<128x128xf32>
      %c0_17 = arith.constant 0 : index
      %c0_18 = arith.constant 0 : index
      %24 = vector.load %arg7[%c0_17, %c0_18] : memref<1x128xf32, #tpu.memory_space<vmem>>, vector<1x128xf32>
      %25 = vector.broadcast %24 : vector<1x128xf32> to vector<128x128xf32>
      %26 = arith.addf %23, %25 : vector<128x128xf32>
      %c0_19 = arith.constant 0 : index
      %c0_20 = arith.constant 0 : index
      %27 = vector.load %arg10[%c0_19, %c0_20] : memref<128x128xf32, #tpu.memory_space<vmem>>, vector<128x128xf32>
      tpu.vector_store %arg10[%c0_19, %c0_20], %26 {strides = array<i32>} : memref<128x128xf32, #tpu.memory_space<vmem>>, vector<128x128xf32>,
    } else {
    }
    %c128_i32 = arith.constant 128 : i32
    %3 = arith.muli %arg1, %c128_i32 : i32
    %4 = tpu.assume_multiple %3, 128 : i32
    %5 = arith.index_cast %4 : i32 to index
    %c0 = arith.constant 0 : index
    %6 = vector.load %arg3[%5, %c0] : memref<128x128xbf16, #tpu.memory_space<vmem>>, vector<128x128xbf16>
    %c0_1 = arith.constant 0 : index
    %c0_2 = arith.constant 0 : index
    %7 = vector.load %arg9[%c0_1, %c0_2] : memref<128x128xf32, #tpu.memory_space<vmem>>, vector<128x128xf32>
    %c0_3 = arith.constant 0 : index
    %c0_4 = arith.constant 0 : index
    %8 = vector.load %arg2[%c0_3, %c0_4] : memref<128x128xi8, #tpu.memory_space<vmem>>, vector<128x128xi8>
    %9 = arith.sitofp %8 : vector<128x128xi8> to vector<128x128xbf16>
    %cst = arith.constant dense<0.000000e+00> : vector<128x128xf32>
    %10 = tpu.matmul %9, %6, %cst {dimension_numbers = #tpu.dot_dimension_numbers<[1], [0], [0], [1], [0, 0, 1, 1], [], []>} : vector<128x128xbf16>, vector<128x128xbf16>, vector<128x128xf32> -> vector<128x128xf32>
    %11 = arith.addf %7, %10 : vector<128x128xf32>
    %c0_5 = arith.constant 0 : index
    %c0_6 = arith.constant 0 : index
    %12 = vector.load %arg9[%c0_5, %c0_6] : memref<128x128xf32, #tpu.memory_space<vmem>>, vector<128x128xf32>
    tpu.vector_store %arg9[%c0_5, %c0_6], %11 {strides = array<i32>} : memref<128x128xf32, #tpu.memory_space<vmem>>, vector<128x128xf32>,
    %c0_i32_7 = arith.constant 0 : i32
    %13 = arith.cmpi eq, %arg1, %c0_i32_7 : i32
    %14 = arith.extui %13 : i1 to i32
    %c0_i32_8 = arith.constant 0 : i32
    %15 = arith.cmpi ne, %14, %c0_i32_8 : i32
    scf.if %15 {
      %c0_9 = arith.constant 0 : index
      %c0_10 = arith.constant 0 : index
      %16 = vector.load %arg9[%c0_9, %c0_10] : memref<128x128xf32, #tpu.memory_space<vmem>>, vector<128x128xf32>
      %c0_11 = arith.constant 0 : index
      %c0_12 = arith.constant 0 : index
      %17 = vector.load %arg4[%c0_11, %c0_12] : memref<128x1xf32, #tpu.memory_space<vmem>>, vector<128x1xf32>
      %18 = vector.broadcast %17 : vector<128x1xf32> to vector<128x128xf32>
      %19 = arith.mulf %16, %18 : vector<128x128xf32>
      %20 = arith.truncf %19 : vector<128x128xf32> to vector<128x128xbf16>
      %c0_13 = arith.constant 0 : index
      %c0_14 = arith.constant 0 : index
      %21 = vector.load %arg5[%c0_13, %c0_14] : memref<128x128xbf16, #tpu.memory_space<vmem>>, vector<128x128xbf16>
      %cst_15 = arith.constant dense<0.000000e+00> : vector<128x128xf32>
      %22 = tpu.matmul %20, %21, %cst_15 {dimension_numbers = #tpu.dot_dimension_numbers<[1], [0], [0], [1], [0, 0, 1, 1], [], []>} : vector<128x128xbf16>, vector<128x128xbf16>, vector<128x128xf32> -> vector<128x128xf32>
      %c0_16 = arith.constant 0 : index
      %c0_17 = arith.constant 0 : index
      %23 = vector.load %arg10[%c0_16, %c0_17] : memref<128x128xf32, #tpu.memory_space<vmem>>, vector<128x128xf32>
      %24 = arith.addf %22, %23 : vector<128x128xf32>
      %cst_18 = arith.constant 0.000000e+00 : f32
      %25 = vector.broadcast %cst_18 : f32 to vector<128x128xf32>
      %26 = arith.maximumf %24, %25 : vector<128x128xf32>
      %27 = arith.truncf %26 : vector<128x128xf32> to vector<128x128xbf16>
      %c0_19 = arith.constant 0 : index
      %c0_20 = arith.constant 0 : index
      %28 = vector.load %arg8[%c0_19, %c0_20] : memref<128x128xbf16, #tpu.memory_space<vmem>>, vector<128x128xbf16>
      tpu.vector_store %arg8[%c0_19, %c0_20], %27 {strides = array<i32>} : memref<128x128xbf16, #tpu.memory_space<vmem>>, vector<128x128xbf16>,
    } else {
    }
    return
  }
  func.func @transform_0(%arg0: i32, %arg1: i32) -> (i32, i32) {
    %c0_i32 = arith.constant 0 : i32
    return %arg0, %arg1 : i32, i32
  }
  func.func @transform_1(%arg0: i32, %arg1: i32) -> (i32, i32) {
    %c0_i32 = arith.constant 0 : i32
    %c0_i32_0 = arith.constant 0 : i32
    %c0_i32_1 = arith.constant 0 : i32
    return %c0_i32, %c0_i32_0 : i32, i32
  }
  func.func @transform_2(%arg0: i32, %arg1: i32) -> (i32, i32) {
    %c0_i32 = arith.constant 0 : i32
    %c0_i32_0 = arith.constant 0 : i32
    return %arg0, %c0_i32 : i32, i32
  }
  func.func @transform_3(%arg0: i32, %arg1: i32) -> (i32, i32) {
    %c0_i32 = arith.constant 0 : i32
    %c0_i32_0 = arith.constant 0 : i32
    %c0_i32_1 = arith.constant 0 : i32
    return %c0_i32, %c0_i32_0 : i32, i32
  }
  func.func @transform_4(%arg0: i32, %arg1: i32) -> (i32, i32) {
    %c0_i32 = arith.constant 0 : i32
    %c0_i32_0 = arith.constant 0 : i32
    %c0_i32_1 = arith.constant 0 : i32
    return %c0_i32, %c0_i32_0 : i32, i32
  }
  func.func @transform_5(%arg0: i32, %arg1: i32) -> (i32, i32) {
    %c0_i32 = arith.constant 0 : i32
    %c0_i32_0 = arith.constant 0 : i32
    %c0_i32_1 = arith.constant 0 : i32
    return %c0_i32, %c0_i32_0 : i32, i32
  }
  func.func @transform_6(%arg0: i32, %arg1: i32) -> (i32, i32) {
    %c0_i32 = arith.constant 0 : i32
    %c0_i32_0 = arith.constant 0 : i32
    return %arg0, %c0_i32 : i32, i32
  }
}

</mosaic_0001>

<bundles_post_ra>
// kernel: tpu_custom_call.1
= control target key start
LH: loop header
LB: loop body
LE: loop exit
PB: predicated region body
PF: predicated region fallthrough
CT: control target
= control target key end

     0   :  { %11 = vsyncpa [#allocation5], 0  ;;  %s1360_s0 = inlined_call_operand.hbm [shape: s8[128,128], index: 0, kind: input, shape index: {}]   ;;  %s1361_s1 = inlined_call_operand.vmem [shape: bf16[128,128], index: 1, kind: input, shape index: {}]   ;;  %s1362_s2 = inlined_call_operand.vmem [shape: f32[128,1], index: 2, kind: input, shape index: {}]   ;;  %s1363_s3 = inlined_call_operand.vmem [shape: bf16[128,128], index: 3, kind: input, shape index: {}]   ;;  %s1364_s4 = inlined_call_operand.hbm [shape: bf16[128,128], index: 4, kind: input, shape index: {}]   ;;  %s1365_s5 = inlined_call_operand.vmem [shape: f32[1,128], index: 5, kind: input, shape index: {}]   ;;  %s1366_s6 = inlined_call_operand.hbm [shape: bf16[128,128], index: 6, kind: output, shape index: {}]  }
   0x1   :  { %12 = vsyncpa [#allocation8], 0 }
   0x2   :  { %13 = vsyncpa [#allocation6], 0  ;;  %s18_s23 = sshll.u32 %s1360_s0, 4  ;;  %s1149_s24 = smov [#allocation4]   ;;  %s19_s23 = int_to_ptr.hbm [resolvable:$true] %s18_s23 }
   0x3   :  { %s20_s25 = sshll.u32 %s1149_s24, 4  ;;  %s37_s28 = sshll.u32 %s1364_s4, 4  ;;  %s21_s25 = int_to_ptr.vmem [resolvable:$true] %s20_s25  ;;  %s38_s28 = int_to_ptr.hbm [resolvable:$true] %s37_s28 }
   0x4   :  { %s1150_s29 = smov 128   ;;  %s1151_s30 = smov 8  }
   0x5   :  { %26 = dma.hbm_to_vmem [thread:$0]  %s19_s23, 512, %s21_s25, [#allocation5], %s1150_s29, %s1150_s29, %s1151_s30  }
   0x6   :  { %s1152_s7 = smov [#allocation7]   ;;  %s1153_s9 = smov 64  }
   0x7   :  { %s39_s8 = sshll.u32 %s1152_s7, 4  ;;  %s1154_s10 = smov 4   ;;  %s40_s8 = int_to_ptr.vmem [resolvable:$true] %s39_s8 }
   0x8   :  { %45 = dma.hbm_to_vmem [thread:$0]  %s38_s28, 1024, %s40_s8, [#allocation8], %s1153_s9, %s1153_s9, %s1154_s10  }
   0x9   :  { %1143 = dma.done.wait [#allocation5], 512  }
   0xa   :  { %1144 = vsyncadd [#allocation5], 4294966784 }
   0xb   :  { %1145 = dma.done.wait [#allocation8], 1024  }
   0xc   :  { %1146 = vsyncadd [#allocation8], 4294966272  ;;  %v1155_v0 = vmov 0   ;;  %v971_v1 = vld [vmem:[#allocation7 + $0x38] sm:$0xff]  ;;  %v507_v3 = vld [vmem:[%s1362_s2] sm:$0xff]  ;;  %s810_s18 = sshll.u32 %s1366_s6, 4  ;;  %s811_s18 = int_to_ptr.hbm [resolvable:$true] %s810_s18 }
   0xd   :  { %1067 = vset.pattern.permute.xlu0 %v1155_v0  ;;  %1068 = vset.pattern.permute.xlu1 %v1155_v0  ;;  %v979_v2 = vld [vmem:[%s1361_s1 + $0x38] sm:$0xff]  ;;  %v970_v4 = vld [vmem:[#allocation7 + $0x30] sm:$0xff]  ;;  %v969_v7 = vld [vmem:[#allocation7 + $0x28] sm:$0xff] }
   0xe   :  { %1069 = vset.pattern.permute.xlu2 %v1155_v0  ;;  %525 = vperm.xlu0 %1067, %v507_v3   ;;  %v978_v5 = vld [vmem:[%s1361_s1 + $0x30] sm:$0xff]  ;;  %v977_v8 = vld [vmem:[%s1361_s1 + $0x28] sm:$0xff]  ;;  %v968_v10 = vld [vmem:[#allocation7 + $0x20] sm:$0xff] }
   0xf   :  { %1035 = vmatpush.bf16.msra.mxu3 %v971_v1  ;;  %407 = vmatpush.bf16.msra.mxu1 %v979_v2  ;;  %v509_v6 = vld [vmem:[%s1362_s2 + $0x10] sm:$0xff]  ;;  %v508_v9 = vld [vmem:[%s1362_s2 + $0x8] sm:$0xff]  ;;  %v976_v11 = vld [vmem:[%s1361_s1 + $0x20] sm:$0xff] }
  0x10   :  { %213 = vmatpush.bf16.msra.mxu0 %v971_v1  ;;  %535 = vperm.xlu1 %1068, %v509_v6   ;;  %v510_v12 = vld [vmem:[%s1362_s2 + $0x18] sm:$0xff]  ;;  %v513_v15 = vld [vmem:[%s1362_s2 + $0x30] sm:$0xff]  ;;  %v315_v18 = vld [vmem:[#allocation4] sm:$0xff] }
  0x11   :  { %v967_v13 = vld [vmem:[#allocation7 + $0x18] sm:$0xff]  ;;  %v966_v16 = vld [vmem:[#allocation7 + $0x10] sm:$0xff]  ;;  %v319_v20 = vunpack.c.0.s8 %v315_v18  ;;  %v320_v21 = vunpack.c.1.s8 %v315_v18  ;;  %v965_v22 = vld [vmem:[#allocation7 + $0x8] sm:$0xff]  ;;  %v321_v35 = vunpack.c.2.s8 %v315_v18  ;;  %v322_v36 = vunpack.c.3.s8 %v315_v18 }
  0x12   :  { %v975_v14 = vld [vmem:[%s1361_s1 + $0x18] sm:$0xff]  ;;  %v974_v17 = vld [vmem:[%s1361_s1 + $0x10] sm:$0xff]  ;;  %v973_v23 = vld [vmem:[%s1361_s1 + $0x8] sm:$0xff] }
  0x13   :  { %1036 = vmatpush.bf16.msra.mxu3 %v970_v4  ;;  %408 = vmatpush.bf16.msra.mxu1 %v978_v5  ;;  %v514_v19 = vld [vmem:[%s1362_s2 + $0x38] sm:$0xff]  ;;  %v516_v24 = vld [vmem:[%s1362_s2 + $0x48] sm:$0xff]  ;;  %v335_v25 = vcvt.s32.f32 %v319_v20  ;;  %v336_v26 = vcvt.s32.f32 %v320_v21  ;;  %v964_v27 = vld [vmem:[#allocation7] sm:$0xff]  ;;  %v337_v39 = vcvt.s32.f32 %v321_v35  ;;  %v338_v40 = vcvt.s32.f32 %v322_v36 }
  0x14   :  { %214 = vmatpush.bf16.msra.mxu0 %v970_v4  ;;  %v972_v28 = vld [vmem:[%s1361_s1] sm:$0xff]  ;;  %v962_v30 = vld [vmem:[%s1361_s1 + $0x30] sm:$0xff]  ;;  %v518_v34 = vld [vmem:[%s1362_s2 + $0x58] sm:$0xff] }
  0x15   :  { %v519_v29 = vld [vmem:[%s1362_s2 + $0x60] sm:$0xff]  ;;  %v351_v31 = vpack.c.bf16 %v336_v26, %v335_v25  ;;  %v517_v32 = vld [vmem:[%s1362_s2 + $0x50] sm:$0xff]  ;;  %v522_v37 = vld [vmem:[%s1362_s2 + $0x78] sm:$0xff]  ;;  %v352_v42 = vpack.c.bf16 %v338_v40, %v337_v39 }
  0x16   :  { %530 = vperm.xlu0 %1067, %v508_v9   ;;  %v511_v33 = vld [vmem:[%s1362_s2 + $0x20] sm:$0xff]  ;;  %v512_v38 = vld [vmem:[%s1362_s2 + $0x28] sm:$0xff]  ;;  %v963_v41 = vld [vmem:[%s1361_s1 + $0x38] sm:$0xff] }
  0x17   :  { %1037 = vmatpush.bf16.msra.mxu3 %v969_v7  ;;  %409 = vmatpush.bf16.msra.mxu1 %v977_v8  ;;  %v515_v43 = vld [vmem:[%s1362_s2 + $0x40] sm:$0xff]  ;;  %v316_v44 = vld [vmem:[#allocation4 + $0x8] sm:$0xff]  ;;  %v318_v45 = vld [vmem:[#allocation4 + $0x18] sm:$0xff] }
  0x18   :  { %215 = vmatpush.bf16.msra.mxu0 %v969_v7  ;;  %540 = vperm.xlu1 %1068, %v510_v12   ;;  %v323_v46 = vunpack.c.0.s8 %v316_v44  ;;  %v324_v47 = vunpack.c.1.s8 %v316_v44  ;;  %v331_v48 = vunpack.c.0.s8 %v318_v45  ;;  %v332_v49 = vunpack.c.1.s8 %v318_v45  ;;  %v520_v50 = vld [vmem:[%s1362_s2 + $0x68] sm:$0xff]  ;;  %v521_v57 = vld [vmem:[%s1362_s2 + $0x70] sm:$0xff]  ;;  %v984_v18 = vld [vmem:[%s1363_s3 + $0x20] sm:$0xff] }
  0x19   :  { %545 = vperm.xlu2 %1069, %v511_v33   ;;  %v325_v58 = vunpack.c.2.s8 %v316_v44  ;;  %v326_v59 = vunpack.c.3.s8 %v316_v44  ;;  %v333_v60 = vunpack.c.2.s8 %v318_v45  ;;  %v334_v61 = vunpack.c.3.s8 %v318_v45  ;;  %v317_v4 = vld [vmem:[#allocation4 + $0x10] sm:$0xff]  ;;  %v981_v21 = vld [vmem:[%s1363_s3 + $0x8] sm:$0xff]  ;;  %v959_v39 = vld [vmem:[%s1361_s1 + $0x18] sm:$0xff] }
  0x1a   :  { %v339_v51 = vcvt.s32.f32 %v323_v46  ;;  %v340_v52 = vcvt.s32.f32 %v324_v47  ;;  %v347_v53 = vcvt.s32.f32 %v331_v48  ;;  %v348_v54 = vcvt.s32.f32 %v332_v49  ;;  %v982_v20 = vld [vmem:[%s1363_s3 + $0x10] sm:$0xff] }
  0x1b   :  { %1038 = vmatpush.bf16.msra.mxu3 %v968_v10  ;;  %410 = vmatpush.bf16.msra.mxu1 %v976_v11  ;;  %v341_v62 = vcvt.s32.f32 %v325_v58  ;;  %v342_v63 = vcvt.s32.f32 %v326_v59  ;;  %v349_v0 = vcvt.s32.f32 %v333_v60  ;;  %v350_v1 = vcvt.s32.f32 %v334_v61 }
  0x1c   :  { %216 = vmatpush.bf16.msra.mxu0 %v968_v10  ;;  %v353_v55 = vpack.c.bf16 %v340_v52, %v339_v51  ;;  %v357_v56 = vpack.c.bf16 %v348_v54, %v347_v53  ;;  %v328_v6 = vunpack.c.1.s8 %v317_v4  ;;  %v987_v10 = vld [vmem:[%s1363_s3 + $0x38] sm:$0xff]  ;;  %v330_v12 = vunpack.c.3.s8 %v317_v4  ;;  %v960_v52 = vld [vmem:[%s1361_s1 + $0x20] sm:$0xff] }
  0x1d   :  { %v358_v3 = vpack.c.bf16 %v350_v1, %v349_v0  ;;  %707 = vmatpush.bf16.msra.mxu2 %v987_v10 }
  0x1e   :  { %555 = vperm.xlu0 %1067, %v513_v15   ;;  %v986_v15 = vld [vmem:[%s1363_s3 + $0x30] sm:$0xff] }
  0x1f   :  { %1039 = vmatpush.bf16.msra.mxu3 %v967_v13  ;;  %411 = vmatpush.bf16.msra.mxu1 %v975_v14 }
  0x20   :  { %217 = vmatpush.bf16.msra.mxu0 %v967_v13  ;;  %560 = vperm.xlu1 %1068, %v514_v19   ;;  %v983_v19 = vld [vmem:[%s1363_s3 + $0x18] sm:$0xff] }
  0x21   :  { %550 = vperm.xlu2 %1069, %v512_v38   ;;  %708 = vmatpush.bf16.msra.mxu2 %v986_v15 }
  0x23   :  { %1040 = vmatpush.bf16.msra.mxu3 %v966_v16  ;;  %412 = vmatpush.bf16.msra.mxu1 %v974_v17 }
  0x24   :  { %218 = vmatpush.bf16.msra.mxu0 %v966_v16 }
  0x26   :  { %570 = vperm.xlu0 %1067, %v516_v24   ;;  %v957_v24 = vld [vmem:[%s1361_s1 + $0x8] sm:$0xff] }
  0x27   :  { %1041 = vmatpush.bf16.msra.mxu3 %v965_v22  ;;  %413 = vmatpush.bf16.msra.mxu1 %v973_v23 }
  0x28   :  { %219 = vmatpush.bf16.msra.mxu0 %v965_v22  ;;  %585 = vperm.xlu1 %1068, %v519_v29   ;;  %v956_v22 = vld [vmem:[%s1361_s1] sm:$0xff] }
  0x29   :  { %565 = vperm.xlu2 %1069, %v515_v43  }
  0x2b   :  { %1042 = vmatpush.bf16.msra.mxu3 %v964_v27  ;;  %414 = vmatpush.bf16.msra.mxu1 %v972_v28 }
  0x2c   :  { %220 = vmatpush.bf16.msra.mxu0 %v964_v27 }
  0x2e   :  { %251 = vmatmul.bf16.vlgmr.msra.gmra.mxu3 %v962_v30  ;;  %415 = vmatmul.bf16.vlgmr.msra.gmra.mxu1 %v351_v31 }
  0x2f   :  { %1043 = vmatpush.bf16.msrb.mxu3 %v979_v2  ;;  %575 = vperm.xlu0 %1067, %v517_v32   ;;  %v354_v2 = vpack.c.bf16 %v342_v63, %v341_v62 }
  0x30   :  { %580 = vperm.xlu1 %1068, %v518_v34   ;;  %221 = vmatmul.bf16.vlgmr.msra.gmra.mxu0 %v956_v22 }
  0x31   :  { %590 = vperm.xlu2 %1069, %v520_v50  }
  0x33   :  { %1044 = vmatpush.bf16.msrb.mxu3 %v978_v5  ;;  %v327_v5 = vunpack.c.0.s8 %v317_v4 }
  0x35   :  { %v343_v7 = vcvt.s32.f32 %v327_v5 }
  0x37   :  { %1045 = vmatpush.bf16.msrb.mxu3 %v977_v8  ;;  %600 = vperm.xlu0 %1067, %v522_v37   ;;  %v344_v8 = vcvt.s32.f32 %v328_v6 }
  0x39   :  { %595 = vperm.xlu2 %1069, %v521_v57   ;;  %v355_v9 = vpack.c.bf16 %v344_v8, %v343_v7 }
  0x3b   :  { %1046 = vmatpush.bf16.msrb.mxu3 %v976_v11  ;;  %v329_v11 = vunpack.c.2.s8 %v317_v4 }
  0x3d   :  { %v345_v13 = vcvt.s32.f32 %v329_v11 }
  0x3e   :  { %256 = vmatmul.bf16.gmra.mxu3 %v963_v41  ;;  %420 = vmatmul.bf16.gmra.mxu1 %v352_v42 }
  0x3f   :  { %1047 = vmatpush.bf16.msrb.mxu3 %v975_v14  ;;  %v346_v14 = vcvt.s32.f32 %v330_v12 }
  0x40   :  { %226 = vmatmul.bf16.gmra.mxu0 %v957_v24 }
  0x41   :  { %v356_v16 = vpack.c.bf16 %v346_v14, %v345_v13 }
  0x43   :  { %1048 = vmatpush.bf16.msrb.mxu3 %v974_v17  ;;  %v985_v17 = vld [vmem:[%s1363_s3 + $0x28] sm:$0xff] }
  0x44   :  { %709 = vmatpush.bf16.msra.mxu2 %v985_v17 }
  0x47   :  { %1049 = vmatpush.bf16.msrb.mxu3 %v973_v23  ;;  %v980_v23 = vld [vmem:[%s1363_s3] sm:$0xff] }
  0x48   :  { %710 = vmatpush.bf16.msra.mxu2 %v984_v18 }
  0x4b   :  { %1050 = vmatpush.bf16.msrb.mxu3 %v972_v28  ;;  %v958_v28 = vld [vmem:[%s1361_s1 + $0x10] sm:$0xff] }
  0x4c   :  { %711 = vmatpush.bf16.msra.mxu2 %v983_v19 }
  0x4e   :  { %425 = vmatmul.bf16.gmra.mxu1 %v353_v55  ;;  %445 = vmatmul.bf16.vlgmr.msrb.gmra.mxu3 %v357_v56 }
  0x4f   :  { %1051 = vmatpush.bf16.msra.mxu3 %v987_v10 }
  0x50   :  { %712 = vmatpush.bf16.msra.mxu2 %v982_v20  ;;  %231 = vmatmul.bf16.gmra.mxu0 %v958_v28 }
  0x53   :  { %1052 = vmatpush.bf16.msra.mxu3 %v986_v15 }
  0x54   :  { %713 = vmatpush.bf16.msra.mxu2 %v981_v21 }
  0x57   :  { %1053 = vmatpush.bf16.msra.mxu3 %v985_v17 }
  0x58   :  { %714 = vmatpush.bf16.msra.mxu2 %v980_v23 }
  0x5b   :  { %1054 = vmatpush.bf16.msra.mxu3 %v984_v18 }
  0x5e   :  { %430 = vmatmul.bf16.gmra.mxu1 %v354_v2  ;;  %450 = vmatmul.bf16.gmra.mxu3 %v358_v3  ;;  %v961_v3 = vld [vmem:[%s1361_s1 + $0x28] sm:$0xff] }
  0x5f   :  { %1055 = vmatpush.bf16.msra.mxu3 %v983_v19 }
  0x60   :  { %236 = vmatmul.bf16.gmra.mxu0 %v959_v39 }
  0x63   :  { %1056 = vmatpush.bf16.msra.mxu3 %v982_v20 }
  0x67   :  { %1057 = vmatpush.bf16.msra.mxu3 %v981_v21 }
  0x6b   :  { %1058 = vmatpush.bf16.msra.mxu3 %v980_v23 }
  0x6e   :  { %435 = vmatmul.bf16.gmra.mxu1 %v355_v9 }
  0x70   :  { %241 = vmatmul.bf16.gmra.mxu0 %v960_v52 }
  0x73   :  { %v546_v36 = vpop.permute.xlu2 %545 }
  0x7b   :  { %v551_v44 = vpop.permute.xlu2 %550 }
  0x7e   :  { %440 = vmatmul.bf16.gmra.mxu1 %v356_v16 }
  0x80   :  { %v526_v25 = vpop.permute.xlu0 %525  ;;  %246 = vmatmul.bf16.gmra.mxu0 %v961_v3 }
  0x82   :  { %v536_v34 = vpop.permute.xlu1 %535 }
  0x83   :  { %v566_v50 = vpop.permute.xlu2 %565 }
  0x88   :  { %v531_v29 = vpop.permute.xlu0 %530 }
  0x8a   :  { %v541_v40 = vpop.permute.xlu1 %540 }
  0x8b   :  { %v591_v59 = vpop.permute.xlu2 %590 }
  0x90   :  { %v556_v47 = vpop.permute.xlu0 %555 }
  0x92   :  { %v561_v49 = vpop.permute.xlu1 %560 }
  0x93   :  { %v596_v9 = vpop.permute.xlu2 %595 }
  0x98   :  { %v571_v54 = vpop.permute.xlu0 %570 }
  0x9a   :  { %v586_v58 = vpop.permute.xlu1 %585 }
  0xa1   :  { %v576_v1 = vpop.permute.xlu0 %575 }
  0xa2   :  { %v581_v20 = vpop.permute.xlu1 %580 }
  0xa9   :  { %v601_v8 = vpop.permute.xlu0 %600 }
  0xab   :  { %v416_v26 = vpop.f32.mrf.mxu1 }
  0xac   :  { %v603_v31 = vmul.f32 %v526_v25, %v416_v26 }
  0xad   :  { %v222_v25 = vpop.f32.mrf.mxu0 }
  0xb1   :  { %v1309_v27 = vpop.f32.mrf.mxu3 }
  0xb3   :  { %v418_v30 = vpop.f32.mrf.mxu1 }
  0xb4   :  { %v604_v32 = vmul.f32 %v531_v29, %v418_v30  ;;  %v1332_v30 = vld [vmem:[%s1365_s5] ss:$0 sm:$0xff]  ;;  %s1156_s5 = smov [#allocation9]  }
  0xb5   :  { %v224_v26 = vpop.f32.mrf.mxu0  ;;  %s808_s15 = sshll.u32 %s1156_s5, 4  ;;  %s809_s15 = int_to_ptr.vmem [resolvable:$true] %s808_s15 }
  0xb6   :  { %v619_v33 = vpack.c.bf16 %v604_v32, %v603_v31  ;;  %v223_v31 = vadd.f32 %v1332_v30, %v222_v25 }
  0xb8   :  { %715 = vmatmul.bf16.vlgmr.msra.gmra.mxu2 %v619_v33  ;;  %v225_v33 = vadd.f32 %v1332_v30, %v224_v26 }
  0xb9   :  { %v1314_v35 = vpop.f32.mrf.mxu3 }
  0xbb   :  { %v421_v37 = vpop.f32.mrf.mxu1 }
  0xbc   :  { %v605_v42 = vmul.f32 %v536_v34, %v421_v37 }
  0xbd   :  { %v227_v28 = vpop.f32.mrf.mxu0 }
  0xc1   :  { %v1316_v38 = vpop.f32.mrf.mxu3 }
  0xc3   :  { %v423_v41 = vpop.f32.mrf.mxu1 }
  0xc4   :  { %v606_v43 = vmul.f32 %v541_v40, %v423_v41 }
  0xc5   :  { %v229_v32 = vpop.f32.mrf.mxu0 }
  0xc6   :  { %v620_v45 = vpack.c.bf16 %v606_v43, %v605_v42 }
  0xc8   :  { %720 = vmatmul.bf16.gmra.mxu2 %v620_v45  ;;  %v230_v45 = vadd.f32 %v1332_v30, %v229_v32 }
  0xc9   :  { %v1321_v46 = vpop.f32.mrf.mxu3 }
  0xcb   :  { %v426_v48 = vpop.f32.mrf.mxu1 }
  0xcc   :  { %v607_v55 = vmul.f32 %v546_v36, %v426_v48 }
  0xcd   :  { %v232_v42 = vpop.f32.mrf.mxu0 }
  0xd1   :  { %v446_v51 = vpop.f32.mrf.mxu3 }
  0xd2   :  { %v615_v61 = vmul.f32 %v586_v58, %v446_v51 }
  0xd3   :  { %v428_v53 = vpop.f32.mrf.mxu1 }
  0xd4   :  { %v608_v56 = vmul.f32 %v551_v44, %v428_v53  ;;  %v228_v44 = vadd.f32 %v1332_v30, %v227_v28 }
  0xd6   :  { %v621_v57 = vpack.c.bf16 %v608_v56, %v607_v55  ;;  %v233_v56 = vadd.f32 %v1332_v30, %v232_v42 }
  0xd8   :  { %725 = vmatmul.bf16.gmra.mxu2 %v621_v57 }
  0xd9   :  { %v448_v60 = vpop.f32.mrf.mxu3 }
  0xda   :  { %v616_v62 = vmul.f32 %v591_v59, %v448_v60 }
  0xdb   :  { %v431_v63 = vpop.f32.mrf.mxu1 }
  0xdc   :  { %v625_v0 = vpack.c.bf16 %v616_v62, %v615_v61  ;;  %v609_v5 = vmul.f32 %v556_v47, %v431_v63  ;;  %v253_v62 = vadd.f32 %v1332_v30, %v1309_v27 }
  0xde   :  { %745 = vmatmul.bf16.vlgmr.msra.gmra.mxu3 %v625_v0 }
  0xe1   :  { %v451_v2 = vpop.f32.mrf.mxu3 }
  0xe2   :  { %v617_v11 = vmul.f32 %v596_v9, %v451_v2  ;;  %v255_v2 = vadd.f32 %v1332_v30, %v1314_v35  ;;  %v258_v35 = vadd.f32 %v1332_v30, %v1316_v38 }
  0xe3   :  { %v433_v4 = vpop.f32.mrf.mxu1 }
  0xe4   :  { %v610_v6 = vmul.f32 %v561_v49, %v433_v4  ;;  %v234_v49 = vpop.f32.mrf.mxu0 }
  0xe5   :  { %v235_v58 = vadd.f32 %v1332_v30, %v234_v49 }
  0xe6   :  { %v622_v7 = vpack.c.bf16 %v610_v6, %v609_v5 }
  0xe8   :  { %730 = vmatmul.bf16.gmra.mxu2 %v622_v7 }
  0xe9   :  { %v453_v10 = vpop.f32.mrf.mxu3 }
  0xea   :  { %v618_v12 = vmul.f32 %v601_v8, %v453_v10 }
  0xeb   :  { %v436_v13 = vpop.f32.mrf.mxu1 }
  0xec   :  { %v626_v14 = vpack.c.bf16 %v618_v12, %v617_v11  ;;  %v611_v16 = vmul.f32 %v566_v50, %v436_v13  ;;  %v237_v55 = vpop.f32.mrf.mxu0 }
  0xed   :  { %v238_v10 = vadd.f32 %v1332_v30, %v237_v55 }
  0xee   :  { %750 = vmatmul.bf16.gmra.mxu3 %v626_v14 }
  0xf3   :  { %v438_v15 = vpop.f32.mrf.mxu1 }
  0xf4   :  { %v612_v17 = vmul.f32 %v571_v54, %v438_v15 }
  0xf6   :  { %v623_v18 = vpack.c.bf16 %v612_v17, %v611_v16 }
  0xf8   :  { %735 = vmatmul.bf16.gmra.mxu2 %v623_v18 }
  0xfb   :  { %v441_v19 = vpop.f32.mrf.mxu1 }
  0xfc   :  { %v613_v22 = vmul.f32 %v576_v1, %v441_v19  ;;  %v239_v1 = vpop.f32.mrf.mxu0  ;;  %v260_v19 = vadd.f32 %v1332_v30, %v1321_v46 }
  0xfd   :  { %v240_v13 = vadd.f32 %v1332_v30, %v239_v1 }
 0x103   :  { %v443_v21 = vpop.f32.mrf.mxu1 }
 0x104   :  { %v614_v23 = vmul.f32 %v581_v20, %v443_v21  ;;  %v242_v12 = vpop.f32.mrf.mxu0 }
 0x106   :  { %v624_v24 = vpack.c.bf16 %v614_v23, %v613_v22 }
 0x108   :  { %740 = vmatmul.bf16.gmra.mxu2 %v624_v24 }
 0x10c   :  { %v244_v24 = vpop.f32.mrf.mxu0 }
 0x10d   :  { %v245_v38 = vadd.f32 %v1332_v30, %v244_v24 }
 0x13b   :  { %v716_v29 = vpop.f32.mrf.mxu2 }
 0x13c   :  { %v717_v34 = vadd.f32 %v716_v29, %v223_v31  ;;  %v243_v29 = vadd.f32 %v1332_v30, %v242_v12 }
 0x13e   :  { %v756_v39 = vmax.f32 %v717_v34, 0.0 }
 0x143   :  { %v718_v36 = vpop.f32.mrf.mxu2 }
 0x144   :  { %v719_v37 = vadd.f32 %v718_v36, %v225_v33  ;;  %v247_v36 = vpop.f32.mrf.mxu0 }
 0x146   :  { %v757_v40 = vmax.f32 %v719_v37, 0.0 }
 0x148   :  { %v991_v41 = vpack.c.bf16 %v757_v40, %v756_v39 }
 0x14a   :  { %992 = vst [vmem:[#allocation9] sm:$0xff] %v991_v41   ;;  %v248_v41 = vadd.f32 %v1332_v30, %v247_v36 }
 0x14b   :  { %v721_v43 = vpop.f32.mrf.mxu2 }
 0x14c   :  { %v722_v47 = vadd.f32 %v721_v43, %v228_v44  ;;  %v249_v42 = vpop.f32.mrf.mxu0 }
 0x14d   :  { %v250_v43 = vadd.f32 %v1332_v30, %v249_v42 }
 0x14e   :  { %v758_v51 = vmax.f32 %v722_v47, 0.0 }
 0x153   :  { %v723_v48 = vpop.f32.mrf.mxu2 }
 0x154   :  { %v724_v50 = vadd.f32 %v723_v48, %v230_v45 }
 0x156   :  { %v759_v52 = vmax.f32 %v724_v50, 0.0 }
 0x158   :  { %v996_v53 = vpack.c.bf16 %v759_v52, %v758_v51 }
 0x15a   :  { %1028 = vst [vmem:[#allocation9 + $0x8] sm:$0xff] %v996_v53  }
 0x15b   :  { %v726_v54 = vpop.f32.mrf.mxu2 }
 0x15c   :  { %v727_v59 = vadd.f32 %v726_v54, %v233_v56 }
 0x15e   :  { %v760_v63 = vmax.f32 %v727_v59, 0.0 }
 0x161   :  { %v746_v57 = vpop.f32.mrf.mxu3 }
 0x162   :  { %v747_v3 = vadd.f32 %v746_v57, %v253_v62 }
 0x163   :  { %v728_v60 = vpop.f32.mrf.mxu2 }
 0x164   :  { %v729_v61 = vadd.f32 %v728_v60, %v235_v58  ;;  %v768_v8 = vmax.f32 %v747_v3, 0.0 }
 0x166   :  { %v761_v0 = vmax.f32 %v729_v61, 0.0 }
 0x168   :  { %v1001_v4 = vpack.c.bf16 %v761_v0, %v760_v63 }
 0x169   :  { %v748_v5 = vpop.f32.mrf.mxu3 }
 0x16a   :  { %1029 = vst [vmem:[#allocation9 + $0x10] sm:$0xff] %v1001_v4   ;;  %v749_v6 = vadd.f32 %v748_v5, %v255_v2 }
 0x16b   :  { %v731_v7 = vpop.f32.mrf.mxu2 }
 0x16c   :  { %v769_v9 = vmax.f32 %v749_v6, 0.0  ;;  %v732_v14 = vadd.f32 %v731_v7, %v238_v10 }
 0x16e   :  { %v1021_v11 = vpack.c.bf16 %v769_v9, %v768_v8  ;;  %v762_v17 = vmax.f32 %v732_v14, 0.0 }
 0x170   :  { %1033 = vst [vmem:[#allocation9 + $0x30] sm:$0xff] %v1021_v11  }
 0x171   :  { %v751_v27 = vpop.f32.mrf.mxu3 }
 0x172   :  { %v752_v20 = vadd.f32 %v751_v27, %v258_v35 }
 0x173   :  { %v733_v15 = vpop.f32.mrf.mxu2 }
 0x174   :  { %v734_v16 = vadd.f32 %v733_v15, %v240_v13  ;;  %v770_v26 = vmax.f32 %v752_v20, 0.0 }
 0x176   :  { %v763_v18 = vmax.f32 %v734_v16, 0.0 }
 0x178   :  { %v1006_v21 = vpack.c.bf16 %v763_v18, %v762_v17 }
 0x179   :  { %v753_v22 = vpop.f32.mrf.mxu3 }
 0x17a   :  { %1030 = vst [vmem:[#allocation9 + $0x18] sm:$0xff] %v1006_v21   ;;  %v754_v23 = vadd.f32 %v753_v22, %v260_v19 }
 0x17b   :  { %v736_v25 = vpop.f32.mrf.mxu2 }
 0x17c   :  { %v771_v28 = vmax.f32 %v754_v23, 0.0  ;;  %v737_v32 = vadd.f32 %v736_v25, %v243_v29 }
 0x17e   :  { %v1026_v31 = vpack.c.bf16 %v771_v28, %v770_v26  ;;  %v764_v46 = vmax.f32 %v737_v32, 0.0 }
 0x180   :  { %1034 = vst [vmem:[#allocation9 + $0x38] sm:$0xff] %v1026_v31  }
 0x183   :  { %v738_v33 = vpop.f32.mrf.mxu2 }
 0x184   :  { %v739_v34 = vadd.f32 %v738_v33, %v245_v38 }
 0x186   :  { %v765_v37 = vmax.f32 %v739_v34, 0.0 }
 0x188   :  { %v1011_v39 = vpack.c.bf16 %v765_v37, %v764_v46 }
 0x18a   :  { %1031 = vst [vmem:[#allocation9 + $0x20] sm:$0xff] %v1011_v39  }
 0x18b   :  { %v741_v40 = vpop.f32.mrf.mxu2 }
 0x18c   :  { %v742_v44 = vadd.f32 %v741_v40, %v248_v41 }
 0x18e   :  { %v766_v48 = vmax.f32 %v742_v44, 0.0 }
 0x193   :  { %v743_v45 = vpop.f32.mrf.mxu2 }
 0x194   :  { %v744_v47 = vadd.f32 %v743_v45, %v250_v43 }
 0x196   :  { %v767_v49 = vmax.f32 %v744_v47, 0.0 }
 0x198   :  { %v1016_v50 = vpack.c.bf16 %v767_v49, %v766_v48 }
 0x19a   :  { %1032 = vst [vmem:[#allocation9 + $0x28] sm:$0xff] %v1016_v50  }
 0x19b   :  { %816 = dma.vmem_to_hbm [thread:$0]  %s809_s15, 1024, %s811_s18, [#allocation6], %s1153_s9, %s1153_s9, %s1154_s10  }
 0x19c   :  { %1147 = dma.done.wait [#allocation6], 1024  }
 0x19d   :  { %1148 = vsyncadd [#allocation6], 4294966272 }
 0x19e   :  { %821 = vsyncpa [#allocation5], 1 }
 0x19f   :  { %822 = vsyncpa [#allocation8], 1 }
 0x1a0   :  { %823 = vsyncpa [#allocation6], 1 }

</bundles_post_ra>
